<compile_context>
chip_gen: v7x
topology: tpu7x:2x2x1
jax: 0.10.0
libtpu: 0.0.40
codegen_flags: <defaults>
</compile_context>

<pallas_src>
import jax
import jax.numpy as jnp
import numpy as np
from jax.experimental import pallas as pl
from jax.experimental.pallas import tpu as pltpu

# ---- problem sizes (mirrors args.* of the PyTorch module) -------------------
B = 8                       # args.BATCH_SIZE
N_AGENTS = 4                # args.n_blue_agents
OBS_DIM = 16                # args.observations_dim
S = N_AGENTS * OBS_DIM      # total_state_dim = 64
H1 = 32                     # args.mixer_hidden_dim
H2 = 4                      # args.mixer_hidden_dim2

W1_COLS = H1 * N_AGENTS     # 128, column c = h*A + a   (torch reshape [B,H1,A])
W2_COLS = H2 * H1           # 128, column c = j*H1 + k  (torch reshape [B,H2,H1])

# fused hypernet output layout (lane offsets; the two 128-wide |W| slabs are
# placed first so they land on full lane-tile boundaries):
OFF_W1 = 0                  # |W1|            : 128 lanes
OFF_W2 = OFF_W1 + W1_COLS   # |W2|            : 128 lanes
OFF_B1 = OFF_W2 + W2_COLS   # biasesL1        : 32 lanes
OFF_B2H = OFF_B1 + H1       # biasesL2 hidden : 32 lanes (pre-ReLU)
CAT = OFF_B2H + H1          # 320 total


# -----------------------------------------------------------------------------
# Pallas kernel: whole mixer forward (fused hypernet matmul + abs/ReLU/ELU +
# both mixing contractions as selector matmuls).
# -----------------------------------------------------------------------------
def qmixer_kernel(
    obs_ref,    # [B, S]
    qin_ref,    # [B, A]
    wcat_ref,   # [S, 320]   fused hypernet weight
    bcat_ref,   # [1, 320]   fused hypernet bias
    s1_ref,     # [A, 128]   qin lane-tiler:      s1[a, c] = (c % A == a)
    s2_ref,     # [128, H1]  layer-1 reducer:     s2[c, h] = (c // A == h)
    s3_ref,     # [H1, 128]  l1 lane-tiler:       s3[k, c] = (c % H1 == k)
    s4_ref,     # [128, H2]  layer-2 reducer:     s4[c, j] = (c // H1 == j)
    b2bw_ref,   # [H1, H2]   biasesL2_net second linear weight
    b2bb_ref,   # [1, H2]    biasesL2_net second linear bias
    out_ref,    # [B, H2]
):
    obs = obs_ref[...]            # [B, S]
    qin = qin_ref[...]            # [B, A]

    # One fused MXU pass for all four obs-conditioned heads, biases folded in.
    z = jnp.dot(obs, wcat_ref[...], preferred_element_type=jnp.float32) + bcat_ref[...]

    w1_abs = jnp.abs(z[:, OFF_W1:OFF_W1 + W1_COLS])          # [B, 128]
    w2_abs = jnp.abs(z[:, OFF_W2:OFF_W2 + W2_COLS])          # [B, 128]
    bl1 = z[:, OFF_B1:OFF_B1 + H1]                           # [B, H1]
    hid = jnp.maximum(z[:, OFF_B2H:OFF_B2H + H1], 0.0)       # [B, H1] (ReLU head)

    # layer 1: l1[b,h] = sum_a |W1|[b, h*A + a] * qin[b, a] + biasesL1[b, h]
    qin_tiled = jnp.dot(qin, s1_ref[...], preferred_element_type=jnp.float32)   # [B, 128]
    l1 = jnp.dot(w1_abs * qin_tiled, s2_ref[...],
                 preferred_element_type=jnp.float32) + bl1                       # [B, H1]
    # ELU (alpha = 1); clamp keeps exp() finite on unselected lanes.
    l1 = jnp.where(l1 > 0.0, l1, jnp.exp(jnp.minimum(l1, 0.0)) - 1.0)

    # layer 2: Qtot[b,j] = sum_k |W2|[b, j*H1 + k] * l1[b, k] + biasesL2[b, j]
    l1_tiled = jnp.dot(l1, s3_ref[...], preferred_element_type=jnp.float32)      # [B, 128]
    qtot = jnp.dot(w2_abs * l1_tiled, s4_ref[...],
                   preferred_element_type=jnp.float32)                           # [B, H2]
    bl2 = jnp.dot(hid, b2bw_ref[...], preferred_element_type=jnp.float32) + b2bb_ref[...]
    out_ref[...] = qtot + bl2


# -----------------------------------------------------------------------------
# Wrapper / param packing (one-time plain-JAX glue) and the pallas_call.
# -----------------------------------------------------------------------------
def _selectors():
    c1 = np.arange(W1_COLS)
    s1 = (c1[None, :] % N_AGENTS == np.arange(N_AGENTS)[:, None]).astype(np.float32)  # [A, 128]
    s2 = (c1[:, None] // N_AGENTS == np.arange(H1)[None, :]).astype(np.float32)       # [128, H1]
    c2 = np.arange(W2_COLS)
    s3 = (c2[None, :] % H1 == np.arange(H1)[:, None]).astype(np.float32)              # [H1, 128]
    s4 = (c2[:, None] // H1 == np.arange(H2)[None, :]).astype(np.float32)             # [128, H2]
    return s1, s2, s3, s4


def pack_qmixer_params(params):
    """One-time packing: fuse the obs->feature heads column-wise (lane-dense)."""
    (W1, bW1, B1w, bB1, W2, bW2, B2aw, bB2a, B2bw, bB2b) = params
    w_cat = jnp.concatenate([W1, W2, B1w, B2aw], axis=1)        # [S, 320]
    b_cat = jnp.concatenate([bW1, bW2, bB1, bB2a])[None, :]     # [1, 320]
    s1, s2, s3, s4 = (jnp.asarray(s) for s in _selectors())
    return (w_cat, b_cat, s1, s2, s3, s4, B2bw, bB2b.reshape(1, H2))


@jax.jit
def qmixer_forward(obs_tot, qin, packed):
    (w_cat, b_cat, s1, s2, s3, s4, B2bw, bB2b) = packed
    vmem = pl.BlockSpec(memory_space=pltpu.MemorySpace.VMEM)
    return pl.pallas_call(
        qmixer_kernel,
        out_shape=jax.ShapeDtypeStruct((B, H2), jnp.float32),
        in_specs=[vmem] * 10,
        out_specs=vmem,
    )(obs_tot, qin, w_cat, b_cat, s1, s2, s3, s4, B2bw, bB2b)


# -----------------------------------------------------------------------------
# Pure-JAX reference (mirrors the PyTorch forward exactly) for verification.
# -----------------------------------------------------------------------------
def qmixer_reference(obs_tot, qin, params):
    (W1, bW1, B1w, bB1, W2, bW2, B2aw, bB2a, B2bw, bB2b) = params
    w1 = jnp.abs(obs_tot @ W1 + bW1).reshape(B, H1, N_AGENTS)
    b1 = obs_tot @ B1w + bB1
    w2 = jnp.abs(obs_tot @ W2 + bW2).reshape(B, H2, H1)
    b2 = jax.nn.relu(obs_tot @ B2aw + bB2a) @ B2bw + bB2b
    l1 = jnp.einsum("bha,ba->bh", w1, qin) + b1
    l1 = jnp.where(l1 > 0.0, l1, jnp.exp(l1) - 1.0)            # ELU
    return jnp.einsum("bkh,bh->bk", w2, l1) + b2


def make_params(key):
    """Deterministic synthetic parameters ([in, out] layout, i.e. W.T vs torch)."""
    ks = jax.random.split(key, 10)
    scale = 0.1
    shapes = [
        (S, H1 * N_AGENTS), (H1 * N_AGENTS,),   # weightsL1_net
        (S, H1), (H1,),                          # biasesL1_net
        (S, H2 * H1), (H2 * H1,),                # weightsL2_net
        (S, H1), (H1,),                          # biasesL2_net[0]
        (H1, H2), (H2,),                         # biasesL2_net[2]
    ]
    return tuple(
        scale * jax.random.normal(k, shp, dtype=jnp.float32)
        for k, shp in zip(ks, shapes)
    )


if __name__ == "__main__":
    key = jax.random.PRNGKey(0)
    k_obs, k_qin, k_par = jax.random.split(key, 3)

    obs_tot = jax.random.normal(k_obs, (B, S), dtype=jnp.float32)
    qin_t = jax.random.normal(k_qin, (B, N_AGENTS), dtype=jnp.float32)
    params = make_params(k_par)
    packed = pack_qmixer_params(params)

    out = qmixer_forward(obs_tot, qin_t, packed)
    out = jax.block_until_ready(out)

    ref = qmixer_reference(obs_tot, qin_t, params)
    np.testing.assert_allclose(np.asarray(out), np.asarray(ref), rtol=1e-5, atol=1e-5)
    print("KERNEL_OK")
</pallas_src>

<mosaic_0001>
module attributes {stable_mosaic.version = 11 : i64} {
  func.func @qmixer_kernel(%arg0: memref<8x64xf32, #tpu.memory_space<vmem>>, %arg1: memref<8x4xf32, #tpu.memory_space<vmem>>, %arg2: memref<64x320xf32, #tpu.memory_space<vmem>>, %arg3: memref<1x320xf32, #tpu.memory_space<vmem>>, %arg4: memref<4x128xf32, #tpu.memory_space<vmem>>, %arg5: memref<128x32xf32, #tpu.memory_space<vmem>>, %arg6: memref<32x128xf32, #tpu.memory_space<vmem>>, %arg7: memref<128x4xf32, #tpu.memory_space<vmem>>, %arg8: memref<32x4xf32, #tpu.memory_space<vmem>>, %arg9: memref<1x4xf32, #tpu.memory_space<vmem>>, %arg10: memref<8x4xf32, #tpu.memory_space<vmem>>) attributes {dimension_semantics = [], scalar_prefetch = 0 : i64, scratch_operands = 0 : i64, tpu.core_type = #tpu.core_type<tc>} {
    %c0 = arith.constant 0 : index
    %c0_0 = arith.constant 0 : index
    %0 = vector.load %arg0[%c0, %c0_0] : memref<8x64xf32, #tpu.memory_space<vmem>>, vector<8x64xf32>
    %c0_1 = arith.constant 0 : index
    %c0_2 = arith.constant 0 : index
    %1 = vector.load %arg1[%c0_1, %c0_2] : memref<8x4xf32, #tpu.memory_space<vmem>>, vector<8x4xf32>
    %c0_3 = arith.constant 0 : index
    %c0_4 = arith.constant 0 : index
    %2 = vector.load %arg2[%c0_3, %c0_4] : memref<64x320xf32, #tpu.memory_space<vmem>>, vector<64x320xf32>
    %cst = arith.constant dense<0.000000e+00> : vector<8x320xf32>
    %3 = tpu.matmul %0, %2, %cst {dimension_numbers = #tpu.dot_dimension_numbers<[1], [0], [0], [1], [0, 0, 1, 1], [], []>} : vector<8x64xf32>, vector<64x320xf32>, vector<8x320xf32> -> vector<8x320xf32>
    %c0_5 = arith.constant 0 : index
    %c0_6 = arith.constant 0 : index
    %4 = vector.load %arg3[%c0_5, %c0_6] : memref<1x320xf32, #tpu.memory_space<vmem>>, vector<1x320xf32>
    %5 = vector.broadcast %4 : vector<1x320xf32> to vector<8x320xf32>
    %6 = arith.addf %3, %5 : vector<8x320xf32>
    %7 = vector.extract_strided_slice %6 {offsets = [0, 0], sizes = [8, 128], strides = [1, 1]} : vector<8x320xf32> to vector<8x128xf32>
    %8 = math.absf %7 : vector<8x128xf32>
    %9 = vector.extract_strided_slice %6 {offsets = [0, 128], sizes = [8, 128], strides = [1, 1]} : vector<8x320xf32> to vector<8x128xf32>
    %10 = math.absf %9 : vector<8x128xf32>
    %11 = vector.extract_strided_slice %6 {offsets = [0, 256], sizes = [8, 32], strides = [1, 1]} : vector<8x320xf32> to vector<8x32xf32>
    %12 = vector.extract_strided_slice %6 {offsets = [0, 288], sizes = [8, 32], strides = [1, 1]} : vector<8x320xf32> to vector<8x32xf32>
    %cst_7 = arith.constant 0.000000e+00 : f32
    %13 = vector.broadcast %cst_7 : f32 to vector<8x32xf32>
    %14 = arith.maximumf %12, %13 : vector<8x32xf32>
    %c0_8 = arith.constant 0 : index
    %c0_9 = arith.constant 0 : index
    %15 = vector.load %arg4[%c0_8, %c0_9] : memref<4x128xf32, #tpu.memory_space<vmem>>, vector<4x128xf32>
    %cst_10 = arith.constant dense<0.000000e+00> : vector<8x128xf32>
    %16 = tpu.matmul %1, %15, %cst_10 {dimension_numbers = #tpu.dot_dimension_numbers<[1], [0], [0], [1], [0, 0, 1, 1], [], []>} : vector<8x4xf32>, vector<4x128xf32>, vector<8x128xf32> -> vector<8x128xf32>
    %17 = arith.mulf %8, %16 : vector<8x128xf32>
    %c0_11 = arith.constant 0 : index
    %c0_12 = arith.constant 0 : index
    %18 = vector.load %arg5[%c0_11, %c0_12] : memref<128x32xf32, #tpu.memory_space<vmem>>, vector<128x32xf32>
    %cst_13 = arith.constant dense<0.000000e+00> : vector<8x32xf32>
    %19 = tpu.matmul %17, %18, %cst_13 {dimension_numbers = #tpu.dot_dimension_numbers<[1], [0], [0], [1], [0, 0, 1, 1], [], []>} : vector<8x128xf32>, vector<128x32xf32>, vector<8x32xf32> -> vector<8x32xf32>
    %20 = arith.addf %19, %11 : vector<8x32xf32>
    %cst_14 = arith.constant 0.000000e+00 : f32
    %21 = vector.broadcast %cst_14 : f32 to vector<8x32xf32>
    %22 = arith.cmpf ogt, %20, %21 : vector<8x32xf32>
    %cst_15 = arith.constant 0.000000e+00 : f32
    %23 = vector.broadcast %cst_15 : f32 to vector<8x32xf32>
    %24 = arith.minimumf %20, %23 : vector<8x32xf32>
    %25 = math.exp %24 : vector<8x32xf32>
    %cst_16 = arith.constant 1.000000e+00 : f32
    %26 = vector.broadcast %cst_16 : f32 to vector<8x32xf32>
    %27 = arith.subf %25, %26 : vector<8x32xf32>
    %28 = arith.select %22, %20, %27 : vector<8x32xi1>, vector<8x32xf32>
    %c0_17 = arith.constant 0 : index
    %c0_18 = arith.constant 0 : index
    %29 = vector.load %arg6[%c0_17, %c0_18] : memref<32x128xf32, #tpu.memory_space<vmem>>, vector<32x128xf32>
    %cst_19 = arith.constant dense<0.000000e+00> : vector<8x128xf32>
    %30 = tpu.matmul %28, %29, %cst_19 {dimension_numbers = #tpu.dot_dimension_numbers<[1], [0], [0], [1], [0, 0, 1, 1], [], []>} : vector<8x32xf32>, vector<32x128xf32>, vector<8x128xf32> -> vector<8x128xf32>
    %31 = arith.mulf %10, %30 : vector<8x128xf32>
    %c0_20 = arith.constant 0 : index
    %c0_21 = arith.constant 0 : index
    %32 = vector.load %arg7[%c0_20, %c0_21] : memref<128x4xf32, #tpu.memory_space<vmem>>, vector<128x4xf32>
    %cst_22 = arith.constant dense<0.000000e+00> : vector<8x4xf32>
    %33 = tpu.matmul %31, %32, %cst_22 {dimension_numbers = #tpu.dot_dimension_numbers<[1], [0], [0], [1], [0, 0, 1, 1], [], []>} : vector<8x128xf32>, vector<128x4xf32>, vector<8x4xf32> -> vector<8x4xf32>
    %c0_23 = arith.constant 0 : index
    %c0_24 = arith.constant 0 : index
    %34 = vector.load %arg8[%c0_23, %c0_24] : memref<32x4xf32, #tpu.memory_space<vmem>>, vector<32x4xf32>
    %cst_25 = arith.constant dense<0.000000e+00> : vector<8x4xf32>
    %35 = tpu.matmul %14, %34, %cst_25 {dimension_numbers = #tpu.dot_dimension_numbers<[1], [0], [0], [1], [0, 0, 1, 1], [], []>} : vector<8x32xf32>, vector<32x4xf32>, vector<8x4xf32> -> vector<8x4xf32>
    %c0_26 = arith.constant 0 : index
    %c0_27 = arith.constant 0 : index
    %36 = vector.load %arg9[%c0_26, %c0_27] : memref<1x4xf32, #tpu.memory_space<vmem>>, vector<1x4xf32>
    %37 = vector.broadcast %36 : vector<1x4xf32> to vector<8x4xf32>
    %38 = arith.addf %35, %37 : vector<8x4xf32>
    %39 = arith.addf %33, %38 : vector<8x4xf32>
    %c0_28 = arith.constant 0 : index
    %c0_29 = arith.constant 0 : index
    %40 = vector.load %arg10[%c0_28, %c0_29] : memref<8x4xf32, #tpu.memory_space<vmem>>, vector<8x4xf32>
    tpu.vector_store %arg10[%c0_28, %c0_29], %39 {strides = array<i32>} : memref<8x4xf32, #tpu.memory_space<vmem>>, vector<8x4xf32>,
    return
  }
}

</mosaic_0001>

<bundles_post_ra>
// kernel: qmixer_forward.1
= control target key start
LH: loop header
LB: loop body
LE: loop exit
PB: predicated region body
PF: predicated region fallthrough
CT: control target
= control target key end

     0   :  { %v930_v3 = vmov 0.0   ;;  %vm931_vm0 = vmmov 0   ;;  %v932_v8 = vmov 0.0|0.0   ;;  %vm78_vm1 = vcmask 523264   ;;  %s1260_s2 = inlined_call_operand.vmem [shape: f32[64,320], index: 2, kind: input, shape index: {}]   ;;  %s1261_s0 = inlined_call_operand.vmem [shape: f32[8,64], index: 0, kind: input, shape index: {}]   ;;  %s1262_s4 = inlined_call_operand.vmem [shape: f32[4,128], index: 4, kind: input, shape index: {}]   ;;  %s1263_s5 = inlined_call_operand.vmem [shape: f32[128,32], index: 5, kind: input, shape index: {}]   ;;  %s1264_s1 = inlined_call_operand.vmem [shape: f32[8,4], index: 1, kind: input, shape index: {}]   ;;  %s1265_s3 = inlined_call_operand.vmem [shape: f32[1,320], index: 3, kind: input, shape index: {}]   ;;  %s1266_s6 = inlined_call_operand.vmem [shape: f32[32,128], index: 6, kind: input, shape index: {}]   ;;  %s1267_s8 = inlined_call_operand.vmem [shape: f32[32,4], index: 8, kind: input, shape index: {}]   ;;  %s1268_s7 = inlined_call_operand.vmem [shape: f32[128,4], index: 7, kind: input, shape index: {}]   ;;  %s1269_s9 = inlined_call_operand.vmem [shape: f32[1,4], index: 9, kind: input, shape index: {}]   ;;  %s1270_s10 = inlined_call_operand.vmem [shape: f32[8,4], index: 10, kind: output, shape index: {}]  }
   0x1   :  { %v38_v0 = vld [vmem:[%s1260_s2 + $0x8] sm:$0xff]  ;;  %v41_v1 = vld [vmem:[%s1260_s2 + $0x20] sm:$0xff]  ;;  %146 = vmatprep.mubr.f32.mxu0 %v930_v3  ;;  %733 = vmatprep.mubr.msk.f32.mxu1 %vm931_vm0, %v930_v3  ;;  %v40_v5 = vld [vmem:[%s1260_s2 + $0x18] sm:$0xff]  ;;  %vm231_vm2 = vcmask 1043456   ;;  %vm227_vm3 = vcmask 31744   ;;  %vm402_vm4 = vcmask 261120  }
   0x2   :  { %v37_v2 = vld [vmem:[%s1260_s2] sm:$0xff]  ;;  %v833_v4 = vpack.c.bf16 %v41_v1, %v38_v0  ;;  %v44_v6 = vld [vmem:[%s1260_s2 + $0x38] sm:$0xff]  ;;  %v47_v7 = vld [vmem:[%s1260_s2 + $0x50] sm:$0xff]  ;;  %849 = vmatprep.subr.bf16.mxu1 %v932_v8  ;;  %v63_v1 = vlaneseq }
   0x3   :  { %v835_v9 = vpack.c.bf16 %v40_v5, %v37_v2  ;;  %v837_v10 = vpack.c.bf16 %v47_v7, %v44_v6  ;;  %v43_v11 = vld [vmem:[%s1260_s2 + $0x30] sm:$0xff]  ;;  %v46_v12 = vld [vmem:[%s1260_s2 + $0x48] sm:$0xff]  ;;  %v53_v14 = vld [vmem:[%s1260_s2 + $0x80] sm:$0xff] }
   0x4   :  { %v50_v13 = vld [vmem:[%s1260_s2 + $0x68] sm:$0xff]  ;;  %834 = vmatprep.subr.bf16.mxu0 %v833_v4  ;;  %v839_v15 = vpack.c.bf16 %v46_v12, %v43_v11  ;;  %v49_v17 = vld [vmem:[%s1260_s2 + $0x60] sm:$0xff]  ;;  %v52_v18 = vld [vmem:[%s1260_s2 + $0x78] sm:$0xff]  ;;  %v1145_v2 = vshrl.u32 %v63_v1, 7 }
   0x5   :  { %836 = vmatpush1.bf16.msra.mxu0 %v835_v9  ;;  %v841_v16 = vpack.c.bf16 %v53_v14, %v50_v13  ;;  %v56_v19 = vld [vmem:[%s1260_s2 + $0x98] sm:$0xff]  ;;  %v59_v20 = vld [vmem:[%s1260_s2 + $0xb0] sm:$0xff]  ;;  %v42_v22 = vld [vmem:[%s1260_s2 + $0x28] sm:$0xff]  ;;  %v843_v26 = vpack.c.bf16 %v52_v18, %v49_v17 }
   0x6   :  { %838 = vmatprep.subr.bf16.mxu0 %v837_v10  ;;  %v39_v21 = vld [vmem:[%s1260_s2 + $0x10] sm:$0xff]  ;;  %v45_v24 = vld [vmem:[%s1260_s2 + $0x40] sm:$0xff]  ;;  %v48_v25 = vld [vmem:[%s1260_s2 + $0x58] sm:$0xff]  ;;  %v845_v27 = vpack.c.bf16 %v59_v20, %v56_v19  ;;  %v65_v4 = vsub.s32 0, %v1145_v2  ;;  %v73_v7 = vsub.s32 2, %v1145_v2 }
   0x7   :  { %v850_v23 = vpack.c.bf16 %v42_v22, %v39_v21  ;;  %v55_v28 = vld [vmem:[%s1260_s2 + $0x90] sm:$0xff]  ;;  %v58_v29 = vld [vmem:[%s1260_s2 + $0xa8] sm:$0xff]  ;;  %v853_v30 = vpack.c.bf16 %v48_v25, %v45_v24  ;;  %v57_v35 = vld [vmem:[%s1260_s2 + $0xa0] sm:$0xff] }
   0x8   :  { %v51_v31 = vld [vmem:[%s1260_s2 + $0x70] sm:$0xff]  ;;  %v54_v32 = vld [vmem:[%s1260_s2 + $0x88] sm:$0xff]  ;;  %v847_v33 = vpack.c.bf16 %v58_v29, %v55_v28  ;;  %v60_v36 = vld [vmem:[%s1260_s2 + $0xb8] sm:$0xff] }
   0x9   :  { %840 = vmatpush1.bf16.msra.mxu0 %v839_v15  ;;  %851 = vmatpush3.bf16.msra.mxu1 %v850_v23  ;;  %v856_v34 = vpack.c.bf16 %v54_v32, %v51_v31  ;;  %v35_v37 = vld [vmem:[%s1261_s0] sm:$0xff]  ;;  %v859_v39 = vpack.c.bf16 %v60_v36, %v57_v35  ;;  %v307_v41 = vld [vmem:[%s1263_s5 + $0x8] sm:$0xff]  ;;  %v308_v44 = vld [vmem:[%s1263_s5 + $0x10] sm:$0xff] }
   0xa   :  { %842 = vmatprep.subr.bf16.mxu0 %v841_v16  ;;  %852 = vmatprep.subr.bf16.mxu1 %v932_v8  ;;  %v226_v38 = vld [vmem:[%s1262_s4] sm:$0xf]  ;;  %v309_v45 = vld [vmem:[%s1263_s5 + $0x18] sm:$0xff]  ;;  %v311_v48 = vld [vmem:[%s1263_s5 + $0x28] sm:$0xff] }
   0xb   :  { %v306_v40 = vld [vmem:[%s1263_s5] sm:$0xff]  ;;  %v865_v46 = vpack.c.bf16 %v309_v45, %v308_v44  ;;  %v312_v50 = vld [vmem:[%s1263_s5 + $0x30] sm:$0xff]  ;;  %v313_v51 = vld [vmem:[%s1263_s5 + $0x38] sm:$0xff] }
   0xc   :  { %v36_v42 = vld [vmem:[%s1264_s1] sm:$0xff]  ;;  %v862_v43 = vpack.c.bf16 %v307_v41, %v306_v40  ;;  %v871_v52 = vpack.c.bf16 %v313_v51, %v312_v50  ;;  %v315_v54 = vld [vmem:[%s1263_s5 + $0x48] sm:$0xff]  ;;  %v316_v56 = vld [vmem:[%s1263_s5 + $0x50] sm:$0xff] }
   0xd   :  { %844 = vmatpush1.bf16.msra.mxu0 %v843_v26  ;;  %854 = vmatpush3.bf16.msra.mxu1 %v853_v30  ;;  %v310_v47 = vld [vmem:[%s1263_s5 + $0x20] sm:$0xff]  ;;  %v317_v57 = vld [vmem:[%s1263_s5 + $0x58] sm:$0xff]  ;;  %v319_v60 = vld [vmem:[%s1263_s5 + $0x68] sm:$0xff] }
   0xe   :  { %846 = vmatprep.subr.bf16.mxu0 %v845_v27  ;;  %855 = vmatprep.subr.bf16.mxu1 %v932_v8  ;;  %v868_v49 = vpack.c.bf16 %v311_v48, %v310_v47  ;;  %v314_v53 = vld [vmem:[%s1263_s5 + $0x40] sm:$0xff]  ;;  %v877_v58 = vpack.c.bf16 %v317_v57, %v316_v56  ;;  %v320_v62 = vld [vmem:[%s1263_s5 + $0x70] sm:$0xff]  ;;  %v321_v63 = vld [vmem:[%s1263_s5 + $0x78] sm:$0xff] }
   0xf   :  { %v874_v55 = vpack.c.bf16 %v315_v54, %v314_v53  ;;  %v318_v59 = vld [vmem:[%s1263_s5 + $0x60] sm:$0xff]  ;;  %v883_v0 = vpack.c.bf16 %v321_v63, %v320_v62  ;;  %v399_v22 = vld [vmem:[%s1266_s6 + $0x8] sm:$0xff]  ;;  %v400_v24 = vld [vmem:[%s1266_s6 + $0x10] sm:$0xff] }
  0x10   :  { %v880_v61 = vpack.c.bf16 %v319_v60, %v318_v59  ;;  %v1151_v5 = vld [vmem:[%s1265_s3] sm:$0x7]  ;;  %s933_s3 = smov 96   ;;  %v401_v25 = vld [vmem:[%s1266_s6 + $0x18] sm:$0xff]  ;;  %v494_v28 = vld [vmem:[%s1267_s8 + $0x8] sm:$0xff] }
  0x11   :  { %848 = vmatpush1.bf16.msra.mxu0 %v847_v33  ;;  %857 = vmatpush3.bf16.msra.mxu1 %v856_v34  ;;  %v66_v6 = vrot.slane %v1151_v5, %v65_v4  ;;  %v74_v12 = vrot.slane %v1151_v5, %v73_v7  ;;  %v398_v21 = vld [vmem:[%s1266_s6] sm:$0xff]  ;;  %v889_v26 = vpack.c.bf16 %v401_v25, %v400_v24  ;;  %v495_v29 = vld [vmem:[%s1267_s8 + $0x10] sm:$0xff]  ;;  %v496_v31 = vld [vmem:[%s1267_s8 + $0x18] sm:$0xff] }
  0x12   :  { %736 = vmatprep.subr.mxu0 %v930_v3  ;;  %858 = vmatprep.subr.bf16.mxu1 %v932_v8  ;;  %v886_v23 = vpack.c.bf16 %v399_v22, %v398_v21  ;;  %v493_v27 = vld [vmem:[%s1267_s8] sm:$0xff]  ;;  %v895_v32 = vpack.c.bf16 %v496_v31, %v495_v29  ;;  %v478_v34 = vld [vmem:[%s1268_s7 + $0x8] sm:$0xff]  ;;  %v479_v36 = vld [vmem:[%s1268_s7 + $0x10] sm:$0xff] }
  0x13   :  { %v892_v30 = vpack.c.bf16 %v494_v28, %v493_v27  ;;  %v477_v33 = vld [vmem:[%s1268_s7] sm:$0xff]  ;;  %v482_v41 = vld [vmem:[%s1268_s7 + $0x28] sm:$0xff]  ;;  %v487_v48 = vld [vmem:[%s1268_s7 + $0x50] sm:$0xff] }
  0x14   :  { %654 = vmatmul.mubr.msk.f32.vlgmr.msra.gmra.mrb[0].mxu0 %vm78_vm1, %v35_v37  ;;  %v898_v35 = vpack.c.bf16 %v478_v34, %v477_v33  ;;  %v481_v40 = vld [vmem:[%s1268_s7 + $0x20] sm:$0xff]  ;;  %v491_v62 = vld [vmem:[%s1268_s7 + $0x70] sm:$0xff] }
  0x15   :  { %737 = vmatpush3.msk.msra.mxu0 %vm231_vm2, %v226_v38  ;;  %738 = vmatprep.mubr.msk.f32.mxu0 %vm931_vm0, %v930_v3  ;;  %v485_v45 = vld [vmem:[%s1268_s7 + $0x40] sm:$0xff] }
  0x16   :  { %860 = vmatpush3.bf16.msra.mxu1 %v859_v39  ;;  %891 = vmatprep.subr.bf16.mxu0 %v932_v8  ;;  %v489_v51 = vld [vmem:[%s1268_s7 + $0x60] sm:$0xff] }
  0x17   :  { %861 = vmatprep.subr.bf16.mxu1 %v932_v8 }
  0x18   :  { %739 = vmatmul.mubr.msk.f32.vlgmr.msra.gmra.mrb[2].mxu0 %vm227_vm3, %v36_v42  ;;  %v904_v42 = vpack.c.bf16 %v482_v41, %v481_v40 }
  0x19   :  { %734 = vmatmul.mubr.msk.f32.vlgmr.msra.gmra.mrb[0].mxu1 %vm78_vm1, %v35_v37  ;;  %795 = vmatprep.mubr.msk.f32.mxu0 %vm931_vm0, %v930_v3  ;;  %v480_v37 = vld [vmem:[%s1268_s7 + $0x18] sm:$0xff] }
  0x1a   :  { %863 = vmatpush3.bf16.msra.mxu1 %v862_v43  ;;  %773 = vmatprep.mubr.msk.f32.mxu1 %vm931_vm0, %v930_v3  ;;  %v901_v39 = vpack.c.bf16 %v480_v37, %v479_v36  ;;  %v483_v43 = vld [vmem:[%s1268_s7 + $0x30] sm:$0xff] }
  0x1b   :  { %864 = vmatprep.subr.bf16.mxu1 %v932_v8  ;;  %893 = vmatpush3.bf16.msra.mxu0 %v892_v30 }
  0x1c   :  { %894 = vmatprep.subr.bf16.mxu0 %v932_v8 }
  0x1e   :  { %866 = vmatpush3.bf16.msra.mxu1 %v865_v46  ;;  %v486_v46 = vld [vmem:[%s1268_s7 + $0x48] sm:$0xff] }
  0x1f   :  { %867 = vmatprep.subr.bf16.mxu1 %v932_v8  ;;  %896 = vmatpush3.bf16.msra.mxu0 %v895_v32  ;;  %v910_v47 = vpack.c.bf16 %v486_v46, %v485_v45 }
  0x20   :  { %897 = vmatprep.subr.bf16.mxu0 %v932_v8 }
  0x22   :  { %869 = vmatpush3.bf16.msra.mxu1 %v868_v49  ;;  %v488_v49 = vld [vmem:[%s1268_s7 + $0x58] sm:$0xff] }
  0x23   :  { %870 = vmatprep.subr.bf16.mxu1 %v932_v8  ;;  %v913_v50 = vpack.c.bf16 %v488_v49, %v487_v48 }
  0x26   :  { %872 = vmatpush3.bf16.msra.mxu1 %v871_v52  ;;  %v490_v52 = vld [vmem:[%s1268_s7 + $0x68] sm:$0xff] }
  0x27   :  { %873 = vmatprep.subr.bf16.mxu1 %v932_v8  ;;  %v916_v53 = vpack.c.bf16 %v490_v52, %v489_v51 }
  0x2a   :  { %875 = vmatpush3.bf16.msra.mxu1 %v874_v55 }
  0x2b   :  { %876 = vmatprep.subr.bf16.mxu1 %v932_v8 }
  0x2e   :  { %878 = vmatpush3.bf16.msra.mxu1 %v877_v58 }
  0x2f   :  { %879 = vmatprep.subr.bf16.mxu1 %v932_v8 }
  0x32   :  { %881 = vmatpush3.bf16.msra.mxu1 %v880_v61 }
  0x33   :  { %882 = vmatprep.subr.bf16.mxu1 %v932_v8 }
  0x36   :  { %884 = vmatpush3.bf16.msra.mxu1 %v883_v0  ;;  %v69_v0 = vsub.s32 1, %v1145_v2 }
  0x37   :  { %885 = vmatprep.subr.bf16.mxu1 %v932_v8 }
  0x38   :  { %v70_v1 = vrot.slane %v1151_v5, %v69_v0 }
  0xe7   :  { %v148_v9 = vpop.f32.mrb[0].mxu0 }
  0xe8   :  { %v149_v10 = vadd.f32 %v148_v9, %v66_v6  ;;  %v1155_v11 = vpop.f32.mrb[1].mxu0 }
  0xe9   :  { %v151_v4 = vadd.f32 %v1155_v11, %v70_v1 }
  0xea   :  { %v223_v13 = vand.u32 2147483647, %v149_v10 }
  0xeb   :  { %v301_v14 = vpop.f32.mrb[2].mxu0  ;;  %v224_v6 = vand.u32 2147483647, %v151_v4 }
  0xec   :  { %v305_v15 = vmul.f32 %v301_v14, %v223_v13  ;;  %v740_v16 = vpop.f32.mrb[3].mxu0  ;;  %v219_v17 = vpop.f32.mrb[0].mxu1 }
  0xed   :  { %v1158_v18 = vadd.f32 %v219_v17, %v74_v12  ;;  %v735_v19 = vpop.f32.mrb[1].mxu1  ;;  %v660_v12 = vld [vmem:[%s1269_s9] ss:$0 sm:$0xff] }
  0xee   :  { %774 = vmatmul.mubr.f32.vlgmr.msra.gmra.mrb[2].mxu1 %v305_v15 }
  0xef   :  { %v225_v20 = vmax.f32 %v1158_v18, 0.0  ;;  %784 = vmatprep.mubr.msk.f32.mxu1 %vm931_vm0, %v930_v3  ;;  %887 = vmatpush3.bf16.msra.mxu1 %v886_v23 }
  0xf0   :  { %888 = vmatprep.subr.bf16.mxu1 %v932_v8 }
  0xf1   :  { %505 = vrot.lane.b32.xlu0 %v225_v20, %s933_s3 }
  0xf3   :  { %890 = vmatpush3.bf16.msra.mxu1 %v889_v26 }
 0x163   :  { %v506_v38 = vpop.permute.xlu0 %505 }
 0x164   :  { %796 = vmatmul.mubr.msk.f32.vlgmr.msra.gmra.mrb[4].mxu0 %vm402_vm4, %v506_v38 }
 0x165   :  { %899 = vmatpush3.bf16.msra.mxu0 %v898_v35  ;;  %830 = vmatprep.mubr.msk.f32.mxu0 %vm931_vm0, %v930_v3  ;;  %v484_v3 = vld [vmem:[%s1268_s7 + $0x38] sm:$0xff] }
 0x166   :  { %900 = vmatprep.subr.bf16.mxu0 %v932_v8  ;;  %v907_v44 = vpack.c.bf16 %v484_v3, %v483_v43 }
 0x169   :  { %902 = vmatpush3.bf16.msra.mxu0 %v901_v39 }
 0x16a   :  { %903 = vmatprep.subr.bf16.mxu0 %v932_v8 }
 0x16d   :  { %905 = vmatpush3.bf16.msra.mxu0 %v904_v42 }
 0x16e   :  { %906 = vmatprep.subr.bf16.mxu0 %v932_v8 }
 0x171   :  { %908 = vmatpush3.bf16.msra.mxu0 %v907_v44 }
 0x172   :  { %909 = vmatprep.subr.bf16.mxu0 %v932_v8 }
 0x175   :  { %911 = vmatpush3.bf16.msra.mxu0 %v910_v47 }
 0x176   :  { %912 = vmatprep.subr.bf16.mxu0 %v932_v8 }
 0x179   :  { %914 = vmatpush3.bf16.msra.mxu0 %v913_v50 }
 0x17a   :  { %915 = vmatprep.subr.bf16.mxu0 %v932_v8 }
 0x17d   :  { %917 = vmatpush3.bf16.msra.mxu0 %v916_v53 }
 0x17e   :  { %918 = vmatprep.subr.bf16.mxu0 %v932_v8  ;;  %v492_v8 = vld [vmem:[%s1268_s7 + $0x78] sm:$0xff] }
 0x17f   :  { %v919_v63 = vpack.c.bf16 %v492_v8, %v491_v62 }
 0x181   :  { %920 = vmatpush3.bf16.msra.mxu0 %v919_v63 }
 0x1c1   :  { %v388_v54 = vpop.f32.mrb[2].mxu1 }
 0x1c2   :  { %v389_v55 = vadd.f32 %v388_v54, %v1158_v18  ;;  %v775_v56 = vpop.f32.mrb[3].mxu1 }
 0x1c4   :  { %v393_v57 = vmin.f32 %v389_v55, 0.0  ;;  %vm392_vm5 = vcmp.gt.f32.partialorder %v389_v55, 0.0 }
 0x1c6   :  { %v394_v58 = vmul.f32 1.442695, %v393_v57 }
 0x1c8   :  { %928 = vpow2.f32 %v394_v58 }
 0x1d2   :  { %v929_v59 = vpop.eup %928 }
 0x1d3   :  { %v658_v60 = vadd.f32 -1.0, %v929_v59 }
 0x1d5   :  { %v397_v61 = vsel %vm392_vm5, %v389_v55, %v658_v60 }
 0x1d6   :  { %785 = vmatmul.mubr.msk.f32.vlgmr.msra.gmra.mrb[4].mxu1 %vm402_vm4, %v397_v61 }
 0x2a9   :  { %v472_v7 = vpop.f32.mrb[4].mxu1 }
 0x2aa   :  { %v476_v9 = vmul.f32 %v472_v7, %v224_v6  ;;  %v786_v10 = vpop.f32.mrb[5].mxu1 }
 0x2ac   :  { %831 = vmatmul.mubr.f32.vlgmr.msra.gmra.mrb[4].mxu0 %v476_v9 }
 0x37f   :  { %v645_v13 = vpop.f32.mrb[4].mxu0 }
 0x380   :  { %v921_v14 = vadd.f32 %v660_v12, %v645_v13  ;;  %v832_v15 = vpop.f32.mrb[5].mxu0 }
 0x382   :  { %649 = vst.msk [vmem:[%s1270_s10] sm:$0xff] %vm227_vm3, %v921_v14 }

</bundles_post_ra>
